<compile_context>
chip_gen: v7x
topology: tpu7x:2x2x1
jax: 0.10.0
libtpu: 0.0.40
codegen_flags: <defaults>
</compile_context>

<pallas_src>
import jax
import jax.numpy as jnp
from jax.experimental import pallas as pl
from jax.experimental.pallas import tpu as pltpu


def _round_up(x: int, m: int) -> int:
    return ((x + m - 1) // m) * m


def _gather_kernel(idx_ref, table_hbm, out_ref, sem):
    # idx_ref:   (T_pad,)  int32   in SMEM (scalar-prefetched, pre-clamped token ids)
    # table_hbm: (V, E)    float32 left in HBM (memory_space=pl.ANY) - never fully loaded
    # out_ref:   (rows, E) float32 VMEM output block for this grid step
    # sem:       scalar DMA semaphore shared by this step's row copies
    rows = out_ref.shape[0]
    base = pl.program_id(0) * rows

    # Issue one row-gather DMA per output row; all stay in flight together so
    # HBM latency is overlapped across rows.
    @pl.loop(0, rows)
    def _(r):
        tok = idx_ref[base + r]
        pltpu.make_async_copy(
            table_hbm.at[pl.ds(tok, 1), :],
            out_ref.at[pl.ds(r, 1), :],
            sem,
        ).start()

    # Drain: wait for every row copy (same byte count per copy, shared sem)
    # before the pipeline writes this output block back to HBM.
    @pl.loop(0, rows)
    def _(r):
        pltpu.make_async_copy(
            table_hbm.at[pl.ds(0, 1), :],
            out_ref.at[pl.ds(r, 1), :],
            sem,
        ).wait()


def embedding_forward(src, emb_table, rows_per_step: int = 256):
    """Pallas equivalent of `_Embedding.forward` on the tensor part of the input.

    src:       (B, S) integer token indices
    emb_table: (num_tokens, emb_dim) float32
    returns:   (B, S, emb_dim) float32
    """
    B, S = src.shape
    V, E = emb_table.shape
    T = B * S

    # Flat int32 indices, clamped so a bad index can never drive an OOB HBM DMA.
    # (Assumes vocab fits in int32; torch passes LongTensor but values are small.)
    idx = jnp.clip(src.reshape(T).astype(jnp.int32), 0, V - 1)

    # Rows gathered per grid step: big enough to amortize per-step overhead and
    # keep many DMAs in flight, multiple of 8 for the output block's sublane dim.
    rows = min(rows_per_step, _round_up(T, 8))
    T_pad = _round_up(T, rows)
    if T_pad != T:
        idx = jnp.pad(idx, (0, T_pad - T))  # padding rows gather row 0; sliced off below

    itemsize = jnp.dtype(emb_table.dtype).itemsize
    grid = (T_pad // rows,)

    out = pl.pallas_call(
        _gather_kernel,
        out_shape=jax.ShapeDtypeStruct((T_pad, E), emb_table.dtype),
        grid_spec=pltpu.PrefetchScalarGridSpec(
            num_scalar_prefetch=1,                       # indices -> SMEM
            grid=grid,
            in_specs=[
                pl.BlockSpec(memory_space=pl.ANY),       # table stays in HBM
            ],
            out_specs=pl.BlockSpec((rows, E), lambda i, idx_ref: (i, 0)),
            scratch_shapes=[pltpu.SemaphoreType.DMA(())],
        ),
        compiler_params=pltpu.CompilerParams(
            # token tiles are independent -> let v7x's two TCs split them
            dimension_semantics=("parallel",),
        ),
        cost_estimate=pl.CostEstimate(
            flops=0,
            transcendentals=0,
            # gather read + output write + index bytes
            bytes_accessed=2 * T_pad * E * itemsize + T_pad * 4,
        ),
    )(idx, emb_table)

    return out[:T].reshape(B, S, E)


def make_orthogonal_embedding(key, num_tokens, emb_dim, dtype=jnp.float32):
    """Deterministic analogue of nn.init.orthogonal_ on the (num_tokens, emb_dim)
    embedding weight. Note: in the PyTorch module, orthogonal_ runs AFTER
    nn.Embedding's padding_idx zeroing, so the padding row is NOT zero; we
    reproduce that (i.e. no re-zeroing of padding_index)."""
    rows, cols = num_tokens, emb_dim
    n, m = (rows, cols) if rows >= cols else (cols, rows)
    a = jax.random.normal(key, (n, m), dtype=jnp.float32)
    q, r = jnp.linalg.qr(a)
    d = jnp.sign(jnp.diagonal(r))
    q = q * d[None, :]
    w = q if rows >= cols else q.T
    return w.astype(dtype)


class EmbeddingModule:
    """JAX mirror of `_Embedding`: forward((src, attn_mask, padding_mask))."""

    def __init__(self, k, num_tokens, emb_dim, padding_index, key):
        self._k = k
        self._num_tokens = num_tokens
        self._emb_dim = emb_dim
        self._padding_index = padding_index  # not re-zeroed, matching torch code path
        self.weight = make_orthogonal_embedding(key, num_tokens, emb_dim)

    def __call__(self, xfmr_input):
        src, attn_mask, padding_mask = xfmr_input
        emb = embedding_forward(src, self.weight)
        return (emb, attn_mask, padding_mask)

    # TODO(synk): the PyTorch `plot()` method (UMAP/t-SNE visualization) has no
    # Pallas equivalent and is intentionally not translated.


if __name__ == "__main__":
    key = jax.random.PRNGKey(0)
    k_w, k_src = jax.random.split(key)

    # small shapes consistent with the module: (batch, seq) int indices
    B, S = 2, 8
    num_tokens, emb_dim, padding_index = 16, 32, 0

    module = EmbeddingModule(
        k=2, num_tokens=num_tokens, emb_dim=emb_dim,
        padding_index=padding_index, key=k_w,
    )

    src = jax.random.randint(k_src, (B, S), 0, num_tokens, dtype=jnp.int32)
    attn_mask = None
    padding_mask = None

    emb_out, attn_out, pad_out = module((src, attn_mask, padding_mask))
    emb_out = jax.block_until_ready(emb_out)

    # correctness check against a plain-JAX gather reference
    ref = jnp.take(module.weight, src, axis=0)
    assert emb_out.shape == (B, S, emb_dim)
    assert jnp.allclose(emb_out, ref, atol=1e-6), "mismatch vs reference gather"

    print("KERNEL_OK")
</pallas_src>

<mosaic_0001>
module attributes {stable_mosaic.version = 11 : i64} {
  func.func @_gather_kernel(%arg0: i32, %arg1: memref<16xi32, #tpu.memory_space<smem>>, %arg2: memref<16x32xf32, #tpu.memory_space<any>>, %arg3: memref<16x32xf32, #tpu.memory_space<vmem>>, %arg4: memref<!tpu.dma_semaphore, #tpu.memory_space<semaphore_mem>>) attributes {dimension_semantics = [#tpu.dimension_semantics<parallel>], iteration_bounds = array<i64: 1>, scalar_prefetch = 1 : i64, scratch_operands = 1 : i64, tpu.core_type = #tpu.core_type<tc>, window_params = [{}, {transform_indices = @transform_1, window_bounds = array<i64: 16, 32>}]} {
    %c16_i32 = arith.constant 16 : i32
    %0 = arith.muli %arg0, %c16_i32 : i32
    %c0_i32 = arith.constant 0 : i32
    %c16_i32_0 = arith.constant 16 : i32
    %1 = arith.addi %c0_i32, %c16_i32_0 : i32
    %c1_i32 = arith.constant 1 : i32
    scf.for %arg5 = %c0_i32 to %1 step %c1_i32  : i32 {
      %c1_i32_6 = arith.constant 1 : i32
      %3 = arith.muli %arg5, %c1_i32_6 : i32
      %c0_i32_7 = arith.constant 0 : i32
      %4 = arith.addi %c0_i32_7, %3 : i32
      %5 = arith.addi %0, %4 : i32
      %6 = arith.index_cast %5 : i32 to index
      %7 = memref.load %arg1[%6] : memref<16xi32, #tpu.memory_space<smem>>
      %c0_i32_8 = arith.constant 0 : i32
      %8 = tpu.memref_slice %arg2[%7, %c0_i32_8] : memref<16x32xf32, #tpu.memory_space<any>> -> memref<1x32xf32, #tpu.memory_space<any>>
      %c0_i32_9 = arith.constant 0 : i32
      %9 = tpu.memref_slice %arg3[%4, %c0_i32_9] : memref<16x32xf32, #tpu.memory_space<vmem>> -> memref<1x32xf32, #tpu.memory_space<vmem>>
      tpu.enqueue_dma source(%8 : memref<1x32xf32, #tpu.memory_space<any>>) target(%9 : memref<1x32xf32, #tpu.memory_space<vmem>>) target_semaphore(%arg4 : memref<!tpu.dma_semaphore, #tpu.memory_space<semaphore_mem>>)
    }
    %c16_i32_1 = arith.constant 16 : i32
    %c0_i32_2 = arith.constant 0 : i32
    %c16_i32_3 = arith.constant 16 : i32
    %2 = arith.addi %c0_i32_2, %c16_i32_3 : i32
    %c1_i32_4 = arith.constant 1 : i32
    scf.for %arg5 = %c0_i32_2 to %2 step %c1_i32_4  : i32 {
      %c1_i32_6 = arith.constant 1 : i32
      %3 = arith.muli %arg5, %c1_i32_6 : i32
      %c0_i32_7 = arith.constant 0 : i32
      %4 = arith.addi %c0_i32_7, %3 : i32
      %c0_i32_8 = arith.constant 0 : i32
      %c0_i32_9 = arith.constant 0 : i32
      %5 = tpu.memref_slice %arg2[%c0_i32_8, %c0_i32_9] : memref<16x32xf32, #tpu.memory_space<any>> -> memref<1x32xf32, #tpu.memory_space<any>>
      %c0_i32_10 = arith.constant 0 : i32
      %6 = tpu.memref_slice %arg3[%4, %c0_i32_10] : memref<16x32xf32, #tpu.memory_space<vmem>> -> memref<1x32xf32, #tpu.memory_space<vmem>>
      tpu.wait_dma2 semaphore(%arg4 : memref<!tpu.dma_semaphore, #tpu.memory_space<semaphore_mem>>) src(%5 : memref<1x32xf32, #tpu.memory_space<any>>) dst(%6 : memref<1x32xf32, #tpu.memory_space<vmem>>)
    }
    %c16_i32_5 = arith.constant 16 : i32
    return
  }
  func.func @transform_1(%arg0: i32, %arg1: memref<16xi32, #tpu.memory_space<smem>>) -> (i32, i32) {
    %c0_i32 = arith.constant 0 : i32
    %c0_i32_0 = arith.constant 0 : i32
    return %arg0, %c0_i32 : i32, i32
  }
}

</mosaic_0001>

<bundles_post_ra>
// kernel: tpu_custom_call.1
= control target key start
LH: loop header
LB: loop body
LE: loop exit
PB: predicated region body
PF: predicated region fallthrough
CT: control target
= control target key end

     0   :  { %s249_s0 = inlined_call_operand.hbm [shape: s32[16], index: 0, kind: input, shape index: {}]   ;;  %s250_s1 = inlined_call_operand.hbm [shape: f32[16,32], index: 1, kind: input, shape index: {}]   ;;  %s251_s2 = inlined_call_operand.hbm [shape: f32[16,32], index: 2, kind: output, shape index: {}]  }
   0x1   :  { %s101_s11 = scalar_lea.hbm %s249_s0, 16 }
   0x2   :  { %p102_p0 = scmp.ne.s32.totalorder %s249_s0, %s101_s11  ;;  %p105_p1 = scmp.lt.u32.totalorder %s101_s11, %s249_s0 }
   0x4   :  { %p107_p2 = pnand %p105_p1, %p102_p0 }
   0x6   :  { %110 = shalt.err (!%p107_p2)  }
   0x7   :  { %s179_s16 = smov [#allocation4]  }
   0x8   :  { %8 = dma.hbm_to_smem %s249_s0, 16, %s179_s16, [#allocation3] }
   0x9   :  { %165 = dma.done.wait [#allocation3], 16 }
   0xa   :  { %166 = vsyncadd [#allocation3], 4294967280 }
   0xb   :  { %10 = sfence }
   0xc   :  { %11 = vsyncpa [#allocation6], 0  ;;  %s210_s19 = smov 0  }
   0xd LB: > { %s20_s20 = sld [smem:[#allocation4 + %s173_s19]]  ;;  %s23_s21 = scalar_lea.vmem [#allocation5], %s173_s19  ;;  %s173_s19 = sphi %s210_s19, %s18_s19  }
   0xe   : > { %s31_s22 = sshll.u32 %s23_s21, 4  ;;  %s113_s29 = scalar_lea.hbm %s250_s1, 256  ;;  %s32_s22 = int_to_ptr.vmem [resolvable:$true] %s31_s22 }
  0x13   : > { %s79_s23 = sshll.u32 %s20_s20, 4 }
  0x14   : > { %s22_s25 = scalar_lea.hbm %s250_s1, %s79_s23 }
  0x15   : > { %s111_s26 = scalar_lea.hbm %s22_s25, 16  ;;  %p114_p4 = scmp.lt.u32.totalorder %s22_s25, %s250_s1 }
  0x16   : > { %p112_p3 = scmp.ne.s32.totalorder %s22_s25, %s111_s26  ;;  %p115_p5 = scmp.lt.u32.totalorder %s113_s29, %s111_s26 }
  0x17   : > { %p117_p7 = scmp.lt.u32.totalorder %s111_s26, %s22_s25 }
  0x18   : > { %p116_p6 = por %p115_p5, %p114_p4 }
  0x1a   : > { %p118_p8 = por %p117_p7, %p116_p6 }
  0x1c   : > { %p119_p9 = pnand %p118_p8, %p112_p3 }
  0x1e   : > { %122 = shalt.err (!%p119_p9)  }
  0x1f   : > { %s123_s4 = scalar_lea.vmem %s32_s22, 16  ;;  %s180_s5 = smov [#allocation5]  }
  0x20   : > { %p124_p10 = scmp.ne.s32.totalorder %s32_s22, %s123_s4  ;;  %s125_s6 = sshll.u32 %s180_s5, 4  ;;  %s226_s6 = int_to_ptr.vmem [resolvable:$false] %s125_s6 }
  0x21   : > { %s127_s7 = scalar_lea.vmem %s226_s6, 256  ;;  %p128_p11 = scmp.lt.s32.totalorder %s32_s22, %s226_s6 }
  0x22   : > { %p129_p12 = scmp.lt.s32.totalorder %s127_s7, %s123_s4 }
  0x24   : > { %p130_p13 = por %p129_p12, %p128_p11 }
  0x26   : > { %p131_p0 = pnand %p130_p13, %p124_p10 }
  0x28   : > { %134 = shalt.err (!%p131_p0)  }
  0x29   : > { %34 = dma.hbm_to_vmem [thread:$0]  %s22_s25, 16, %s32_s22, [#allocation2] }
  0x2a   : > { %s18_s19 = sadd.s32 1, %s173_s19  }
  0x2b   : > { %p15_p1 = scmp.ge.s32.totalorder %s18_s19, 16  }
  0x2c   :  { %s175_s8 = smov (%p15_p1), 0  }
  0x2d   :  { %17 = sbr.rel (!%p15_p1) target bundleno = 13 (0xd), region = 40 }
  0x34 LB: > { %167 = dma.done.wait [#allocation2], 16  ;;  %s177_s8 = sphi %s175_s8, %s40_s8  }
  0x35   : > { %168 = vsyncadd [#allocation2], 4294967280  ;;  %s40_s8 = sadd.s32 1, %s177_s8  }
  0x36   : > { %p37_p2 = scmp.ge.s32.totalorder %s40_s8, 16  }
  0x37   :  { %p136_p3 = scmp.ne.s32.totalorder (%p37_p2), %s226_s6, %s127_s7  ;;  %p140_p4 = scmp.lt.s32.totalorder (%p37_p2), %s226_s6, %s226_s6 }
  0x38   :  { %39 = sbr.rel (!%p37_p2) target bundleno = 52 (0x34), region = 51  ;;  %p141_p5 = scmp.lt.s32.totalorder (%p37_p2), %s127_s7, %s127_s7 }
  0x3a   :  { %p142_p6 = por (%p37_p2), %p141_p5, %p140_p4 }
  0x3c   :  { %p143_p7 = pnand (%p37_p2), %p142_p6, %p136_p3 }
  0x3f   :  { %146 = shalt.err (!%p143_p7)
}
  0x40   :  { %s147_s10 = scalar_lea.hbm %s251_s2, 256 }
  0x41   :  { %p148_p8 = scmp.ne.s32.totalorder %s251_s2, %s147_s10  ;;  %p151_p9 = scmp.lt.u32.totalorder %s147_s10, %s251_s2 }
  0x43   :  { %p153_p10 = pnand %p151_p9, %p148_p8 }
  0x45   :  { %156 = shalt.err (!%p153_p10)
}
  0x46   :  { %s181_s15 = smov 128   ;;  %s182_s16 = smov 8  }
  0x47   :  { %55 = dma.vmem_to_hbm [thread:$0]  %s226_s6, 256, %s251_s2, [#allocation6], %s181_s15, %s181_s15, %s182_s16  }
  0x48   :  { %169 = dma.done.wait [#allocation6], 256  }
  0x49   :  { %170 = vsyncadd [#allocation6], 4294967040 }
  0x4a   :  { %59 = vsyncpa [#allocation6], 1 }
  0x4b   :  { %60 = vsyncmov [#allocation2] }
  0x4e   :  { %s61_s19 = vpop.sfrf %60 }
  0x4f   :  { %p80_p11 = scmp.ne.s32.totalorder %s61_s19, 0 }
  0x51   :  { %65 = shalt.err (%p80_p11)  }

</bundles_post_ra>
